<compile_context>
chip_gen: v6e
topology: v6e:2x2x1
jax: 0.10.0
libtpu: 0.0.40
codegen_flags: <defaults>
</compile_context>

<pallas_src>
import jax
import jax.numpy as jnp
from jax.experimental import pallas as pl
from jax.experimental.pallas import tpu as pltpu

EPS = 1e-5


def make_ffn_kernel(d0, d1, d2):
    """Kernel factory; d0/d1/d2 are static so all param-tile slices are free static views."""
    g1_row = d0 + d1
    b1_row = d0 + d1 + 1
    bb2_row = d0 + d1 + 2

    def kernel(x_ref, p_ref, o_ref):
        # ---- BN0 (training-mode batch stats over axis 0) ----
        # gamma0 is folded into W1' (one-time, wrapper); beta0 and Linear1's bias are per-column
        # constants cancelled by BN1's batch-mean subtraction, so they never appear here.
        x = x_ref[...].astype(jnp.float32)
        mean0 = jnp.mean(x, axis=0, keepdims=True)
        xc = x - mean0
        var0 = jnp.mean(xc * xc, axis=0, keepdims=True)      # mean-centered (two-pass) variance
        xhat = xc * jax.lax.rsqrt(var0 + EPS)

        # ---- Linear1: single matmul against the W1' row-block of the packed param tile ----
        h = jnp.dot(xhat, p_ref[0:d0, :], preferred_element_type=jnp.float32)

        # ---- BN1 (training-mode) + ReLU, reassociated affine ----
        mean1 = jnp.mean(h, axis=0, keepdims=True)
        hc = h - mean1
        var1 = jnp.mean(hc * hc, axis=0, keepdims=True)
        scale1 = jax.lax.rsqrt(var1 + EPS) * p_ref[g1_row:g1_row + 1, :]   # [1, d1]
        h = hc * scale1 + p_ref[b1_row:b1_row + 1, :]
        h = jnp.maximum(h, 0.0)

        # ---- Linear2 (output head, Identity activation) ----
        w2 = p_ref[d0:d0 + d1, 0:d2]
        bb2 = p_ref[bb2_row:bb2_row + 1, 0:d2]
        o_ref[...] = (jnp.dot(h, w2, preferred_element_type=jnp.float32)
                      + bb2).astype(o_ref.dtype)

    return kernel


def prepare_ffn_operand(params, sizes):
    """ONE-TIME parameter prep (hoisted out of the hot path).

    Folds BN0 gamma into W1 and packs every live parameter into a single f32 tile:
      rows [0, d0)          : W1' = g0[:, None] * W1            (cols 0:d1)
      rows [d0, d0+d1)      : W2                                 (cols 0:d2)
      row  d0+d1            : g1  (BN1 gamma)                    (cols 0:d1)
      row  d0+d1+1          : b1  (BN1 beta)                     (cols 0:d1)
      row  d0+d1+2          : bb2 (Linear2 bias)                 (cols 0:d2)
    b0 and bb1 are mathematically dead under training-mode BN1 and are dropped.
    """
    d0, d1, d2 = sizes
    assert d2 <= d1
    w1f = params["g0"].reshape(d0, 1) * params["w1"]
    cols = max(d1, d2)
    rows = ((d0 + d1 + 3 + 7) // 8) * 8
    p = jnp.zeros((rows, cols), jnp.float32)
    p = p.at[0:d0, 0:d1].set(w1f.astype(jnp.float32))
    p = p.at[d0:d0 + d1, 0:d2].set(params["w2"].astype(jnp.float32))
    p = p.at[d0 + d1, 0:d1].set(params["g1"].reshape(d1).astype(jnp.float32))
    p = p.at[d0 + d1 + 1, 0:d1].set(params["b1"].reshape(d1).astype(jnp.float32))
    p = p.at[d0 + d1 + 2, 0:d2].set(params["bb2"].reshape(d2).astype(jnp.float32))
    return jax.device_put(p)


def ffn_forward(packed_params, sizes, *args):
    """Forward pass. `packed_params` comes from prepare_ffn_operand (computed once);
    *args are the pieces concatenated along the last dim (like FFN.forward(*args))."""
    d0, d1, d2 = sizes
    x = args[0] if len(args) == 1 else jnp.concatenate(args, axis=-1)
    assert int(x.shape[-1]) == d0, (x.shape, d0)
    B = int(x.shape[0])

    vmem = pl.BlockSpec(memory_space=pltpu.MemorySpace.VMEM)
    flops = 2 * B * d0 * d1 + 2 * B * d1 * d2 + 12 * B * (d0 + d1)
    bytes_accessed = 4 * (B * d0 + int(packed_params.size) + B * d2)

    return pl.pallas_call(
        make_ffn_kernel(d0, d1, d2),
        out_shape=jax.ShapeDtypeStruct((B, d2), x.dtype),
        in_specs=[vmem, vmem],
        out_specs=vmem,
        cost_estimate=pl.CostEstimate(flops=flops, transcendentals=0,
                                      bytes_accessed=bytes_accessed),
    )(x, packed_params)


def init_ffn_params(key, sizes):
    """Deterministic parameter init matching FFN(sizes) layer shapes.

    BatchNorm1d: weight=1, bias=0 (PyTorch default).  Linear(j-1 -> j): PyTorch weight is
    [out, in]; stored here transposed as [in, out]; plus bias [out].  Seeded normal values.
    """
    d0, d1, d2 = sizes
    k1, k2, k3, k4 = jax.random.split(key, 4)
    return {
        # BatchNorm1d(d0)
        "g0": jnp.ones((1, d0), jnp.float32),
        "b0": jnp.zeros((1, d0), jnp.float32),
        # Linear(d0, d1)  (stored as [d0, d1])
        "w1": jax.random.normal(k1, (d0, d1), jnp.float32) * 0.1,
        "bb1": jax.random.normal(k2, (1, d1), jnp.float32) * 0.1,
        # BatchNorm1d(d1)
        "g1": jnp.ones((1, d1), jnp.float32),
        "b1": jnp.zeros((1, d1), jnp.float32),
        # Linear(d1, d2)  (stored as [d1, d2])
        "w2": jax.random.normal(k3, (d1, d2), jnp.float32) * 0.1,
        "bb2": jax.random.normal(k4, (1, d2), jnp.float32) * 0.1,
    }


if __name__ == "__main__":
    sizes = (32, 64, 16)
    B = 8

    key = jax.random.PRNGKey(0)
    kp, ka, kb = jax.random.split(key, 3)
    params = init_ffn_params(kp, sizes)

    # One-time parameter prep (hoisted out of the per-call path).
    packed_params = prepare_ffn_operand(params, sizes)

    # Two input tensors whose last dims concatenate to sizes[0] = 32 (like forward(*args)).
    a = jax.random.normal(ka, (B, 16), jnp.float32)
    b = jax.random.normal(kb, (B, 16), jnp.float32)

    out = ffn_forward(packed_params, sizes, a, b)
    jax.block_until_ready(out)

    assert out.shape == (B, sizes[-1]), out.shape
    assert jnp.all(jnp.isfinite(out))
    print("KERNEL_OK")
</pallas_src>

<mosaic_0001>
module attributes {stable_mosaic.version = 11 : i64} {
  func.func @kernel(%arg0: memref<8x32xf32, #tpu.memory_space<vmem>>, %arg1: memref<104x64xf32, #tpu.memory_space<vmem>>, %arg2: memref<8x16xf32, #tpu.memory_space<vmem>>) attributes {dimension_semantics = [], scalar_prefetch = 0 : i64, scratch_operands = 0 : i64, tpu.core_type = #tpu.core_type<tc>} {
    %c0 = arith.constant 0 : index
    %c0_0 = arith.constant 0 : index
    %0 = vector.load %arg0[%c0, %c0_0] : memref<8x32xf32, #tpu.memory_space<vmem>>, vector<8x32xf32>
    %cst = arith.constant dense<0.000000e+00> : vector<32xf32>
    %1 = vector.multi_reduction <add>, %0, %cst [0] : vector<8x32xf32> to vector<32xf32>
    %2 = vector.shape_cast %1 : vector<32xf32> to vector<1x32xf32>
    %cst_1 = arith.constant 8.000000e+00 : f32
    %3 = vector.broadcast %cst_1 : f32 to vector<1x32xf32>
    %4 = arith.divf %2, %3 : vector<1x32xf32>
    %5 = vector.broadcast %4 : vector<1x32xf32> to vector<8x32xf32>
    %6 = arith.subf %0, %5 : vector<8x32xf32>
    %7 = arith.mulf %6, %6 : vector<8x32xf32>
    %cst_2 = arith.constant dense<0.000000e+00> : vector<32xf32>
    %8 = vector.multi_reduction <add>, %7, %cst_2 [0] : vector<8x32xf32> to vector<32xf32>
    %9 = vector.shape_cast %8 : vector<32xf32> to vector<1x32xf32>
    %cst_3 = arith.constant 8.000000e+00 : f32
    %10 = vector.broadcast %cst_3 : f32 to vector<1x32xf32>
    %11 = arith.divf %9, %10 : vector<1x32xf32>
    %cst_4 = arith.constant 9.99999974E-6 : f32
    %12 = vector.broadcast %cst_4 : f32 to vector<1x32xf32>
    %13 = arith.addf %11, %12 : vector<1x32xf32>
    %14 = math.rsqrt %13 : vector<1x32xf32>
    %15 = vector.broadcast %14 : vector<1x32xf32> to vector<8x32xf32>
    %16 = arith.mulf %6, %15 : vector<8x32xf32>
    %c0_5 = arith.constant 0 : index
    %c0_6 = arith.constant 0 : index
    %17 = vector.load %arg1[%c0_5, %c0_6] : memref<104x64xf32, #tpu.memory_space<vmem>>, vector<32x64xf32>
    %cst_7 = arith.constant dense<0.000000e+00> : vector<8x64xf32>
    %18 = tpu.matmul %16, %17, %cst_7 {dimension_numbers = #tpu.dot_dimension_numbers<[1], [0], [0], [1], [0, 0, 1, 1], [], []>} : vector<8x32xf32>, vector<32x64xf32>, vector<8x64xf32> -> vector<8x64xf32>
    %cst_8 = arith.constant dense<0.000000e+00> : vector<64xf32>
    %19 = vector.multi_reduction <add>, %18, %cst_8 [0] : vector<8x64xf32> to vector<64xf32>
    %20 = vector.shape_cast %19 : vector<64xf32> to vector<1x64xf32>
    %cst_9 = arith.constant 8.000000e+00 : f32
    %21 = vector.broadcast %cst_9 : f32 to vector<1x64xf32>
    %22 = arith.divf %20, %21 : vector<1x64xf32>
    %23 = vector.broadcast %22 : vector<1x64xf32> to vector<8x64xf32>
    %24 = arith.subf %18, %23 : vector<8x64xf32>
    %25 = arith.mulf %24, %24 : vector<8x64xf32>
    %cst_10 = arith.constant dense<0.000000e+00> : vector<64xf32>
    %26 = vector.multi_reduction <add>, %25, %cst_10 [0] : vector<8x64xf32> to vector<64xf32>
    %27 = vector.shape_cast %26 : vector<64xf32> to vector<1x64xf32>
    %cst_11 = arith.constant 8.000000e+00 : f32
    %28 = vector.broadcast %cst_11 : f32 to vector<1x64xf32>
    %29 = arith.divf %27, %28 : vector<1x64xf32>
    %cst_12 = arith.constant 9.99999974E-6 : f32
    %30 = vector.broadcast %cst_12 : f32 to vector<1x64xf32>
    %31 = arith.addf %29, %30 : vector<1x64xf32>
    %32 = math.rsqrt %31 : vector<1x64xf32>
    %c96 = arith.constant 96 : index
    %c0_13 = arith.constant 0 : index
    %33 = vector.load %arg1[%c96, %c0_13] : memref<104x64xf32, #tpu.memory_space<vmem>>, vector<1x64xf32>
    %34 = arith.mulf %32, %33 : vector<1x64xf32>
    %35 = vector.broadcast %34 : vector<1x64xf32> to vector<8x64xf32>
    %36 = arith.mulf %24, %35 : vector<8x64xf32>
    %c97 = arith.constant 97 : index
    %c0_14 = arith.constant 0 : index
    %37 = vector.load %arg1[%c97, %c0_14] : memref<104x64xf32, #tpu.memory_space<vmem>>, vector<1x64xf32>
    %38 = vector.broadcast %37 : vector<1x64xf32> to vector<8x64xf32>
    %39 = arith.addf %36, %38 : vector<8x64xf32>
    %cst_15 = arith.constant 0.000000e+00 : f32
    %40 = vector.broadcast %cst_15 : f32 to vector<8x64xf32>
    %41 = arith.maximumf %39, %40 : vector<8x64xf32>
    %c32 = arith.constant 32 : index
    %c0_16 = arith.constant 0 : index
    %42 = vector.load %arg1[%c32, %c0_16] : memref<104x64xf32, #tpu.memory_space<vmem>>, vector<64x16xf32>
    %c98 = arith.constant 98 : index
    %c0_17 = arith.constant 0 : index
    %43 = vector.load %arg1[%c98, %c0_17] : memref<104x64xf32, #tpu.memory_space<vmem>>, vector<1x16xf32>
    %cst_18 = arith.constant dense<0.000000e+00> : vector<8x16xf32>
    %44 = tpu.matmul %41, %42, %cst_18 {dimension_numbers = #tpu.dot_dimension_numbers<[1], [0], [0], [1], [0, 0, 1, 1], [], []>} : vector<8x64xf32>, vector<64x16xf32>, vector<8x16xf32> -> vector<8x16xf32>
    %45 = vector.broadcast %43 : vector<1x16xf32> to vector<8x16xf32>
    %46 = arith.addf %44, %45 : vector<8x16xf32>
    %c0_19 = arith.constant 0 : index
    %c0_20 = arith.constant 0 : index
    %47 = vector.load %arg2[%c0_19, %c0_20] : memref<8x16xf32, #tpu.memory_space<vmem>>, vector<8x16xf32>
    tpu.vector_store %arg2[%c0_19, %c0_20], %46 {strides = array<i32>} : memref<8x16xf32, #tpu.memory_space<vmem>>, vector<8x16xf32>,
    return
  }
}

</mosaic_0001>

<bundles_post_ra>
// kernel: tpu_custom_call.1
= control target key start
LH: loop header
LB: loop body
LE: loop exit
PB: predicated region body
PF: predicated region fallthrough
CT: control target
= control target key end

     0   :  { %vm13_vm0 = vcmask 261120   ;;  %v327_v1 = vmov 0.0   ;;  %vm328_vm1 = vmmov 0   ;;  %s402_s0 = inlined_call_operand.vmem [shape: f32[8,32], index: 0, kind: input, shape index: {}]   ;;  %s403_s1 = inlined_call_operand.vmem [shape: f32[104,64], index: 1, kind: input, shape index: {}]   ;;  %s404_s2 = inlined_call_operand.hbm [shape: f32[8,16], index: 2, kind: output, shape index: {}]  }
   0x1   :  { %v39_v0 = vld [vmem:[%s403_s1 + $0x18] sm:$0xff]  ;;  %268 = vmatprep.subr.mxu0 %v327_v1  ;;  %v38_v2 = vld [vmem:[%s403_s1 + $0x10] sm:$0xff]  ;;  %276 = vmatprep.mubr.msk.f32.mxu0 %vm328_vm1, %v327_v1  ;;  %v12_v3 = vld [vmem:[%s402_s0] sm:$0xff] }
   0x2   :  { %7 = vsyncpa [#allocation3], 0  ;;  %269 = vmatpush3.msra.mxu0 %v39_v0  ;;  %v14_v4 = vsel %vm13_vm0, %v12_v3, 0.0  ;;  %279 = vmatprep.subr.mxu1 %v327_v1  ;;  %v37_v5 = vld [vmem:[%s403_s1 + $0x8] sm:$0xff]  ;;  %v36_v7 = vld [vmem:[%s403_s1] sm:$0xff]  ;;  %vm113_vm2 = vcmask 523264   ;;  %v136_v56 = vlaneseq }
   0x3   :  { %270 = vmatprep.subr.mxu0 %v327_v1  ;;  %v15_v6 = vrot.slane %v14_v4, 4  ;;  %295 = vmatprep.mubr.msk.f32.mxu1 %vm328_vm1, %v327_v1  ;;  %v155_v27 = vld [vmem:[%s403_s1 + $0x58] sm:$0xff]  ;;  %v154_v28 = vld [vmem:[%s403_s1 + $0x50] sm:$0xff]  ;;  %v153_v29 = vld [vmem:[%s403_s1 + $0x48] sm:$0xff]  ;;  %s329_s12 = smov [#allocation2]   ;;  %vm234_vm3 = vcmask 130048  }
   0x4   :  { %271 = vmatpush3.msra.mxu0 %v38_v2  ;;  %280 = vmatpush3.msra.mxu1 %v155_v27  ;;  %v152_v30 = vld [vmem:[%s403_s1 + $0x40] sm:$0xff]  ;;  %v151_v31 = vld [vmem:[%s403_s1 + $0x38] sm:$0xff]  ;;  %v150_v32 = vld [vmem:[%s403_s1 + $0x30] sm:$0xff]  ;;  %v137_v57 = vshrl.u32 %v136_v56, 7  ;;  %s242_s13 = sshll.u32 %s329_s12, 4  ;;  %s243_s13 = int_to_ptr.vmem [resolvable:$true] %s242_s13 }
   0x5   :  { %272 = vmatprep.subr.mxu0 %v327_v1  ;;  %v16_v8 = vadd.f32 %v15_v6, %v14_v4  ;;  %281 = vmatprep.subr.mxu1 %v327_v1  ;;  %v149_v33 = vld [vmem:[%s403_s1 + $0x28] sm:$0xff]  ;;  %v148_v34 = vld [vmem:[%s403_s1 + $0x20] sm:$0xff]  ;;  %s305_s14 = scalar_lea.vmem %s243_s13, 128  ;;  %p310_p1 = scmp.lt.s32.totalorder %s243_s13, %s243_s13 }
   0x6   :  { %273 = vmatpush3.msra.mxu0 %v37_v5  ;;  %282 = vmatpush3.msra.mxu1 %v154_v28  ;;  %v134_v58 = vld [vmem:[%s403_s1 + $0x60] sm:$0x1]  ;;  %v138_v59 = vsub.s32 0, %v137_v57  ;;  %v251_v63 = vld [vmem:[%s403_s1 + $0x61] ss:$0 sm:$0xff]  ;;  %p306_p0 = scmp.ne.s32.totalorder %s243_s13, %s305_s14  ;;  %p311_p2 = scmp.lt.s32.totalorder %s305_s14, %s305_s14 }
   0x7   :  { %274 = vmatprep.subr.mxu0 %v327_v1  ;;  %v17_v9 = vrot.slane %v16_v8, 2  ;;  %283 = vmatprep.subr.mxu1 %v327_v1 }
   0x8   :  { %275 = vmatpush3.msra.mxu0 %v36_v7  ;;  %284 = vmatpush3.msra.mxu1 %v153_v29  ;;  %p312_p3 = por %p311_p2, %p310_p1 }
   0x9   :  { %v18_v10 = vadd.f32 %v17_v9, %v16_v8  ;;  %285 = vmatprep.subr.mxu1 %v327_v1 }
   0xa   :  { %286 = vmatpush3.msra.mxu1 %v152_v30  ;;  %p313_p4 = pnand %p312_p3, %p306_p0 }
   0xb   :  { %v19_v11 = vrot.slane %v18_v10, 1  ;;  %287 = vmatprep.subr.mxu1 %v327_v1 }
   0xc   :  { %288 = vmatpush3.msra.mxu1 %v151_v31 }
   0xd   :  { %v20_v12 = vadd.f32 %v19_v11, %v18_v10  ;;  %289 = vmatprep.subr.mxu1 %v327_v1 }
   0xe   :  { %290 = vmatpush3.msra.mxu1 %v150_v32 }
   0xf   :  { %v22_v13 = vmul.f32 0.125, %v20_v12  ;;  %291 = vmatprep.subr.mxu1 %v327_v1 }
  0x10   :  { %292 = vmatpush3.msra.mxu1 %v149_v33 }
  0x11   :  { %v23_v14 = vsub.f32 %v12_v3, %v22_v13  ;;  %293 = vmatprep.subr.mxu1 %v327_v1  ;;  %v252_v3 = vld [vmem:[%s403_s1 + $0x62] ss:$0 sm:$0xff] }
  0x12   :  { %294 = vmatpush3.msra.mxu1 %v148_v34 }
  0x13   :  { %v24_v15 = vmul.f32 %v23_v14, %v23_v14 }
  0x15   :  { %v25_v16 = vsel %vm13_vm0, %v24_v15, 0.0 }
  0x16   :  { %v26_v17 = vrot.slane %v25_v16, 4 }
  0x18   :  { %v27_v18 = vadd.f32 %v26_v17, %v25_v16 }
  0x1a   :  { %v28_v19 = vrot.slane %v27_v18, 2 }
  0x1c   :  { %v29_v20 = vadd.f32 %v28_v19, %v27_v18 }
  0x1e   :  { %v30_v21 = vrot.slane %v29_v20, 1 }
  0x20   :  { %v31_v22 = vadd.f32 %v30_v21, %v29_v20 }
  0x22   :  { %v32_v23 = vmul.f32 0.125, %v31_v22 }
  0x24   :  { %v33_v24 = vadd.f32 1e-05, %v32_v23 }
  0x26   :  { %301 = vrsqrt.f32 %v33_v24 }
  0x33   :  { %v302_v25 = vpop.eup %301 }
  0x34   :  { %v35_v26 = vmul.f32 %v302_v25, %v23_v14 }
  0x36   :  { %277 = vmatmul.mubr.msk.f32.vlgmr.msra.gmra.mxu0 %vm13_vm0, %v35_v26 }
  0xf6   :  { %v109_v35 = vpop.f32.mrf.mxu0 }
  0xf7   :  { %v114_v36 = vsel %vm113_vm2, %v109_v35, 0.0 }
  0xf8   :  { %v115_v37 = vrot.slane %v114_v36, 4  ;;  %v278_v38 = vpop.f32.mrf.mxu0 }
  0xfa   :  { %v116_v39 = vadd.f32 %v115_v37, %v114_v36 }
  0xfc   :  { %v117_v40 = vrot.slane %v116_v39, 2 }
  0xfe   :  { %v118_v41 = vadd.f32 %v117_v40, %v116_v39 }
 0x100   :  { %v119_v42 = vrot.slane %v118_v41, 1 }
 0x102   :  { %v120_v43 = vadd.f32 %v119_v42, %v118_v41 }
 0x104   :  { %v121_v44 = vmul.f32 0.125, %v120_v43 }
 0x106   :  { %v122_v45 = vsub.f32 %v109_v35, %v121_v44 }
 0x108   :  { %v123_v46 = vmul.f32 %v122_v45, %v122_v45 }
 0x10a   :  { %v124_v47 = vsel %vm113_vm2, %v123_v46, 0.0 }
 0x10b   :  { %v125_v48 = vrot.slane %v124_v47, 4 }
 0x10d   :  { %v126_v49 = vadd.f32 %v125_v48, %v124_v47 }
 0x10f   :  { %v127_v50 = vrot.slane %v126_v49, 2 }
 0x111   :  { %v128_v51 = vadd.f32 %v127_v50, %v126_v49 }
 0x113   :  { %v129_v52 = vrot.slane %v128_v51, 1 }
 0x115   :  { %v130_v53 = vadd.f32 %v129_v52, %v128_v51 }
 0x117   :  { %v131_v54 = vmul.f32 0.125, %v130_v53 }
 0x119   :  { %v132_v55 = vadd.f32 1e-05, %v131_v54 }
 0x11b   :  { %303 = vrsqrt.f32 %v132_v55 }
 0x128   :  { %v304_v60 = vpop.eup %303 }
 0x129   :  { %v135_v61 = vmul.f32 %v304_v60, %v134_v58 }
 0x12b   :  { %v139_v62 = vrot.slane %v135_v61, %v138_v59 }
 0x12d   :  { %v140_v0 = vmul.f32 %v139_v62, %v122_v45 }
 0x12f   :  { %v146_v1 = vadd.f32 %v251_v63, %v140_v0 }
 0x131   :  { %v147_v2 = vmax.f32 %v146_v1, 0.0 }
 0x133   :  { %296 = vmatmul.mubr.msk.f32.vlgmr.msra.gmra.mxu1 %vm113_vm2, %v147_v2 }
 0x1f3   :  { %v230_v4 = vpop.f32.mrf.mxu1 }
 0x1f4   :  { %v231_v5 = vadd.f32 %v252_v3, %v230_v4 }
 0x1f5   :  { %v297_v6 = vpop.f32.mrf.mxu1 }
 0x1f6   :  { %235 = vst.msk [vmem:[#allocation2] sm:$0xff] %vm234_vm3, %v231_v5 }
 0x1f7   :  { %316 = shalt.err (!%p313_p4)
}
 0x1f8   :  { %245 = dma.vmem_to_hbm [thread:$0]  %s243_s13, 128, %s404_s2, [#allocation3]  }
 0x1f9   :  { %325 = dma.done.wait [#allocation3], 128  }
 0x1fa   :  { %326 = vsyncadd [#allocation3], 4294967168 }
 0x1fb   :  { %249 = vsyncpa [#allocation3], 1 }

</bundles_post_ra>
